<compile_context>
chip_gen: v7x
topology: tpu7x:2x2x1
jax: 0.10.0
libtpu: 0.0.40
codegen_flags: <defaults>
</compile_context>

<pallas_src>
import functools

import jax
import jax.numpy as jnp
from jax.experimental import pallas as pl
from jax.experimental.pallas import tpu as pltpu


def _conv3x3_banded_kernel(x_ref, w_ref, b_ref, o_ref, *, bt, H, WCi, WCo):
    """One grid step = `bt` (list*batch) elements.

    x_ref: (bt*H, WCi)   image rows, channels-last, flattened to (w, ci) lanes
    w_ref: (3, WCi, WCo) banded weights, one per vertical tap kh (resident)
    b_ref: (1, WCo)      bias tiled across w (resident)
    o_ref: (bt*H, WCo)   lane-dense output rows
    """
    x = x_ref[...]                                  # (bt*H, WCi)
    x3 = x.reshape(bt, H, WCi)

    # Sublane-shifted row blocks (per element): x_prev[h] = x[h-1], x_next[h] = x[h+1].
    # The inserted zero row encodes the vertical pad=1 border and keeps elements
    # within the block independent of each other.
    zrow = jnp.zeros((bt, 1, WCi), dtype=x.dtype)
    x_prev = jnp.concatenate([zrow, x3[:, :H - 1, :]], axis=1).reshape(bt * H, WCi)
    x_next = jnp.concatenate([x3[:, 1:, :], zrow], axis=1).reshape(bt * H, WCi)

    # Three MXU dots (K=WCi, N=WCo) with f32 accumulation; the kw taps and their
    # zero border are folded into the banded weight matrices.
    acc = jnp.dot(x, w_ref[1], preferred_element_type=jnp.float32)
    acc += jnp.dot(x_prev, w_ref[0], preferred_element_type=jnp.float32)
    acc += jnp.dot(x_next, w_ref[2], preferred_element_type=jnp.float32)
    acc += b_ref[...].astype(jnp.float32)

    o_ref[...] = acc.astype(o_ref.dtype)            # lane-dense (., WCo) store


def _banded_weights(weight, W):
    """(Cout, Cin, 3, 3) PyTorch weights -> (3, W*Cin, W*Cout) banded matrices.

    band[kh, w_in*Cin + ci, w_out*Cout + co] = weight[co, ci, kh, w_in - w_out + 1]
    when |w_in - w_out| <= 1, else 0 (zeros encode the horizontal pad=1 border).
    """
    Cout, Cin, _, _ = weight.shape
    w_t = jnp.transpose(weight, (2, 3, 1, 0))                 # (kh, kw, Cin, Cout)
    w_in = jnp.arange(W)[:, None]
    w_out = jnp.arange(W)[None, :]
    kw_idx = w_in - w_out + 1                                  # (W_in, W_out)
    valid = (kw_idx >= 0) & (kw_idx < 3)
    sel = w_t[:, jnp.clip(kw_idx, 0, 2)]                       # (3, W, W, Cin, Cout)
    sel = jnp.where(valid[None, :, :, None, None], sel, 0.0)
    # -> (kh, w_in, ci, w_out, co) -> (3, W*Cin, W*Cout)
    return jnp.transpose(sel, (0, 1, 3, 2, 4)).reshape(3, W * Cin, W * Cout)


def _pick_block_b(B, H, WCi, WCo):
    """Elements per grid step: big enough to amortise per-step overhead, small
    enough for v7x VMEM, and leaving >= 2 grid steps for megacore sharding."""
    per_elem = H * (WCi * 2 * 2        # bf16 input rows, double-buffered
                    + WCo * 4 * 2      # f32 output rows, double-buffered
                    + WCo * 4 * 3)     # f32 accumulator + shifted live values
    cap = max(1, (8 << 20) // per_elem)            # ~8 MiB per step budget
    cap = min(cap, 256, B)
    if B >= 2:
        cap = min(cap, max(1, B // 2))             # keep >= 2 steps (v7x 2 TCs)
    bt = 1
    for d in range(1, cap + 1):                    # largest divisor of B <= cap
        if B % d == 0:
            bt = d
    return bt


def module_parallel(x_parallel, weight, bias, *, compute_dtype=jnp.bfloat16):
    """ModuleParallel.forward for a wrapped Conv2d(Cin, Cout, 3, padding=1).

    x_parallel: list of NCHW tensors (must share shape/dtype so they can be
    stacked into a single pallas_call).  Returns the list of NCHW outputs.
    """
    shapes = {tuple(x.shape) for x in x_parallel}
    dtypes = {x.dtype for x in x_parallel}
    assert len(shapes) == 1 and len(dtypes) == 1, (
        "this Pallas ModuleParallel assumes all parallel inputs share shape/dtype")

    L = len(x_parallel)
    N, Cin, H, W = x_parallel[0].shape
    Cout = weight.shape[0]
    B = L * N
    WCi, WCo = W * Cin, W * Cout
    out_dtype = x_parallel[0].dtype

    # One stack + one NCHW -> NHWC transpose + bf16 cast for the whole list.
    x = jnp.stack(x_parallel, axis=0).reshape(B, Cin, H, W)
    x_rows = (jnp.transpose(x, (0, 2, 3, 1))       # (B, H, W, Cin)
              .reshape(B * H, WCi)                 # flattened image rows
              .astype(compute_dtype))

    band = _banded_weights(weight, W).astype(compute_dtype)    # (3, WCi, WCo)
    b_row = jnp.tile(bias, W).reshape(1, WCo).astype(jnp.float32)

    bt = _pick_block_b(B, H, WCi, WCo)
    grid = (B // bt,)

    kernel = functools.partial(_conv3x3_banded_kernel, bt=bt, H=H, WCi=WCi, WCo=WCo)

    out2d = pl.pallas_call(
        kernel,
        out_shape=jax.ShapeDtypeStruct((B * H, WCo), out_dtype),
        grid_spec=pltpu.PrefetchScalarGridSpec(
            num_scalar_prefetch=0,
            grid=grid,
            in_specs=[
                pl.BlockSpec((bt * H, WCi), lambda i: (i, 0)),
                pl.BlockSpec((3, WCi, WCo), lambda i: (0, 0, 0)),   # resident
                pl.BlockSpec((1, WCo), lambda i: (0, 0)),           # resident
            ],
            out_specs=pl.BlockSpec((bt * H, WCo), lambda i: (i, 0)),
        ),
        compiler_params=pltpu.CompilerParams(
            dimension_semantics=("parallel",),      # megacore sharding on v7x
            vmem_limit_bytes=32 * 1024 * 1024,      # safe on v5e/v6e/v7x
        ),
    )(x_rows, band, b_row)

    # (B*H, W*Cout) -> (L, N, H, W, Cout) -> NCHW per list element.
    out = out2d.reshape(L, N, H, W, Cout)
    out = jnp.transpose(out, (0, 1, 4, 2, 3))
    return [out[i] for i in range(L)]


module_parallel_jit = jax.jit(module_parallel, static_argnames=("compute_dtype",))


def _conv3x3_ref(x_nchw, weight, bias):
    out = jax.lax.conv_general_dilated(
        x_nchw, weight, window_strides=(1, 1), padding="SAME",
        dimension_numbers=("NCHW", "OIHW", "NCHW"))
    return out + bias[None, :, None, None]


if __name__ == "__main__":
    key = jax.random.PRNGKey(0)
    k_x0, k_x1, k_w, k_b = jax.random.split(key, 4)

    N, Cin, H, W, Cout = 2, 4, 16, 16, 8

    # The "list of parallel inputs" that ModuleParallel maps over.
    x_parallel = [
        jax.random.normal(k_x0, (N, Cin, H, W), dtype=jnp.float32),
        jax.random.normal(k_x1, (N, Cin, H, W), dtype=jnp.float32),
    ]

    # Deterministic synthetic parameters for the wrapped Conv2d(4, 8, 3, padding=1).
    weight = jax.random.normal(k_w, (Cout, Cin, 3, 3), dtype=jnp.float32) * 0.1
    bias = jax.random.normal(k_b, (Cout,), dtype=jnp.float32) * 0.1

    outs = module_parallel_jit(x_parallel, weight, bias)
    outs = [jax.block_until_ready(o) for o in outs]

    # Sanity-check against the XLA reference conv (bf16 inputs/weights with f32
    # accumulation -> tolerance loosened vs the pure-f32 check).
    for x, o in zip(x_parallel, outs):
        ref = _conv3x3_ref(x, weight, bias)
        assert o.shape == (N, Cout, H, W)
        assert jnp.allclose(o, ref, atol=5e-2, rtol=5e-2), float(
            jnp.max(jnp.abs(o - ref)))

    print("KERNEL_OK")
</pallas_src>

<mosaic_0001>
module attributes {stable_mosaic.version = 11 : i64} {
  func.func @_conv3x3_banded_kernel(%arg0: i32, %arg1: memref<32x64xbf16, #tpu.memory_space<vmem>>, %arg2: memref<3x64x128xbf16, #tpu.memory_space<vmem>>, %arg3: memref<1x128xf32, #tpu.memory_space<vmem>>, %arg4: memref<32x128xf32, #tpu.memory_space<vmem>>) attributes {dimension_semantics = [#tpu.dimension_semantics<parallel>], iteration_bounds = array<i64: 2>, scalar_prefetch = 0 : i64, scratch_operands = 0 : i64, tpu.core_type = #tpu.core_type<tc>, window_params = [{transform_indices = @transform_0, window_bounds = array<i64: 32, 64>}, {pipeline_mode = #tpu.pipeline_mode<synchronous>, transform_indices = @transform_1, window_bounds = array<i64: 3, 64, 128>}, {pipeline_mode = #tpu.pipeline_mode<synchronous>, transform_indices = @transform_2, window_bounds = array<i64: 1, 128>}, {transform_indices = @transform_3, window_bounds = array<i64: 32, 128>}]} {
    %c0 = arith.constant 0 : index
    %c0_0 = arith.constant 0 : index
    %0 = vector.load %arg1[%c0, %c0_0] : memref<32x64xbf16, #tpu.memory_space<vmem>>, vector<32x64xbf16>
    %1 = vector.shape_cast %0 : vector<32x64xbf16> to vector<2x16x64xbf16>
    %cst = arith.constant 0.000000e+00 : bf16
    %2 = vector.broadcast %cst : bf16 to vector<2x1x64xbf16>
    %3 = vector.extract_strided_slice %1 {offsets = [0, 0, 0], sizes = [2, 15, 64], strides = [1, 1, 1]} : vector<2x16x64xbf16> to vector<2x15x64xbf16>
    %4 = tpu.concatenate %2, %3 in 1 : vector<2x1x64xbf16>, vector<2x15x64xbf16> -> vector<2x16x64xbf16>
    %5 = vector.shape_cast %4 : vector<2x16x64xbf16> to vector<32x64xbf16>
    %6 = vector.extract_strided_slice %1 {offsets = [0, 1, 0], sizes = [2, 15, 64], strides = [1, 1, 1]} : vector<2x16x64xbf16> to vector<2x15x64xbf16>
    %7 = tpu.concatenate %6, %2 in 1 : vector<2x15x64xbf16>, vector<2x1x64xbf16> -> vector<2x16x64xbf16>
    %8 = vector.shape_cast %7 : vector<2x16x64xbf16> to vector<32x64xbf16>
    %c1 = arith.constant 1 : index
    %c0_1 = arith.constant 0 : index
    %c0_2 = arith.constant 0 : index
    %9 = vector.load %arg2[%c1, %c0_1, %c0_2] : memref<3x64x128xbf16, #tpu.memory_space<vmem>>, vector<1x64x128xbf16>
    %10 = vector.shape_cast %9 : vector<1x64x128xbf16> to vector<64x128xbf16>
    %cst_3 = arith.constant dense<0.000000e+00> : vector<32x128xf32>
    %11 = tpu.matmul %0, %10, %cst_3 {dimension_numbers = #tpu.dot_dimension_numbers<[1], [0], [0], [1], [0, 0, 1, 1], [], []>} : vector<32x64xbf16>, vector<64x128xbf16>, vector<32x128xf32> -> vector<32x128xf32>
    %c0_4 = arith.constant 0 : index
    %c0_5 = arith.constant 0 : index
    %c0_6 = arith.constant 0 : index
    %12 = vector.load %arg2[%c0_4, %c0_5, %c0_6] : memref<3x64x128xbf16, #tpu.memory_space<vmem>>, vector<1x64x128xbf16>
    %13 = vector.shape_cast %12 : vector<1x64x128xbf16> to vector<64x128xbf16>
    %cst_7 = arith.constant dense<0.000000e+00> : vector<32x128xf32>
    %14 = tpu.matmul %5, %13, %cst_7 {dimension_numbers = #tpu.dot_dimension_numbers<[1], [0], [0], [1], [0, 0, 1, 1], [], []>} : vector<32x64xbf16>, vector<64x128xbf16>, vector<32x128xf32> -> vector<32x128xf32>
    %15 = arith.addf %11, %14 : vector<32x128xf32>
    %c2 = arith.constant 2 : index
    %c0_8 = arith.constant 0 : index
    %c0_9 = arith.constant 0 : index
    %16 = vector.load %arg2[%c2, %c0_8, %c0_9] : memref<3x64x128xbf16, #tpu.memory_space<vmem>>, vector<1x64x128xbf16>
    %17 = vector.shape_cast %16 : vector<1x64x128xbf16> to vector<64x128xbf16>
    %cst_10 = arith.constant dense<0.000000e+00> : vector<32x128xf32>
    %18 = tpu.matmul %8, %17, %cst_10 {dimension_numbers = #tpu.dot_dimension_numbers<[1], [0], [0], [1], [0, 0, 1, 1], [], []>} : vector<32x64xbf16>, vector<64x128xbf16>, vector<32x128xf32> -> vector<32x128xf32>
    %19 = arith.addf %15, %18 : vector<32x128xf32>
    %c0_11 = arith.constant 0 : index
    %c0_12 = arith.constant 0 : index
    %20 = vector.load %arg3[%c0_11, %c0_12] : memref<1x128xf32, #tpu.memory_space<vmem>>, vector<1x128xf32>
    %21 = vector.broadcast %20 : vector<1x128xf32> to vector<32x128xf32>
    %22 = arith.addf %19, %21 : vector<32x128xf32>
    %c0_13 = arith.constant 0 : index
    %c0_14 = arith.constant 0 : index
    %23 = vector.load %arg4[%c0_13, %c0_14] : memref<32x128xf32, #tpu.memory_space<vmem>>, vector<32x128xf32>
    tpu.vector_store %arg4[%c0_13, %c0_14], %22 {strides = array<i32>} : memref<32x128xf32, #tpu.memory_space<vmem>>, vector<32x128xf32>,
    return
  }
  func.func @transform_0(%arg0: i32) -> (i32, i32) {
    %c0_i32 = arith.constant 0 : i32
    %c0_i32_0 = arith.constant 0 : i32
    return %arg0, %c0_i32 : i32, i32
  }
  func.func @transform_1(%arg0: i32) -> (i32, i32, i32) {
    %c0_i32 = arith.constant 0 : i32
    %c0_i32_0 = arith.constant 0 : i32
    %c0_i32_1 = arith.constant 0 : i32
    %c0_i32_2 = arith.constant 0 : i32
    return %c0_i32, %c0_i32_0, %c0_i32_1 : i32, i32, i32
  }
  func.func @transform_2(%arg0: i32) -> (i32, i32) {
    %c0_i32 = arith.constant 0 : i32
    %c0_i32_0 = arith.constant 0 : i32
    %c0_i32_1 = arith.constant 0 : i32
    return %c0_i32, %c0_i32_0 : i32, i32
  }
  func.func @transform_3(%arg0: i32) -> (i32, i32) {
    %c0_i32 = arith.constant 0 : i32
    %c0_i32_0 = arith.constant 0 : i32
    return %arg0, %c0_i32 : i32, i32
  }
}

</mosaic_0001>

<bundles_post_ra>
// kernel: tile.8
= control target key start
LH: loop header
LB: loop body
LE: loop exit
PB: predicated region body
PF: predicated region fallthrough
CT: control target
= control target key end

     0   :  { %s28_s0 = inlined_call_operand.vmem [shape: f32[8], index: 0, kind: input, shape index: {}]   ;;  %s29_s1 = inlined_call_operand.vmem [shape: f32[16,8], index: 1, kind: output, shape index: {}]  }
   0x1   :  { %v4_v0 = vld [vmem:[%s28_s0] ss:$0 sm:$0xff] }
   0x2   :  { %5 = vst [vmem:[%s29_s1] sm:$0xff] %v4_v0  ;;  %8 = vst [vmem:[%s29_s1 + $0x8] sm:$0xff] %v4_v0 }

// kernel: tile.9
= control target key start
LH: loop header
LB: loop body
LE: loop exit
PB: predicated region body
PF: predicated region fallthrough
CT: control target
= control target key end

     0   :  { %s131_s10 = smov 120   ;;  %s132_s11 = smov 104   ;;  %vm3_vm0 = vcmask 64512   ;;  %vm9_vm1 = vcmask 1048512   ;;  %vm15_vm2 = vcmask 982912   ;;  %vm21_vm3 = vcmask 917312   ;;  %s207_s0 = inlined_call_operand.vmem [shape: f32[16,8], index: 0, kind: input, shape index: {}]   ;;  %s208_s1 = inlined_call_operand.vmem [shape: f32[1,128], index: 1, kind: output, shape index: {}]  }
   0x1   :  { %v101_v0 = vld [vmem:[%s207_s0 + $0xf] sm:$0x1]   ;;  %v103_v1 = vld [vmem:[%s207_s0 + $0xd] sm:$0x1]   ;;  %v102_v2 = vld [vmem:[%s207_s0 + $0xe] sm:$0x1]  }
   0x2   :  { %7 = vrot.lane.b32.xlu0 %v101_v0, %s131_s10  ;;  %19 = vrot.lane.b32.xlu1 %v103_v1, %s132_s11  ;;  %v104_v3 = vld [vmem:[%s207_s0 + $0xc] sm:$0x1]   ;;  %s133_s16 = smov 112   ;;  %s134_s17 = smov 96   ;;  %v105_v4 = vld [vmem:[%s207_s0 + $0xb] sm:$0x1]  }
   0x3   :  { %v106_v5 = vld [vmem:[%s207_s0 + $0xa] sm:$0x1]   ;;  %v2_v6 = vld [vmem:[%s207_s0] sm:$0x1]   ;;  %s135_s24 = smov 88   ;;  %s136_s25 = smov 80  }
   0x4   :  { %4 = vst.msk [vmem:[#allocation0] sm:$0x1] %vm3_vm0, %v2_v6   ;;  %v107_v7 = vld [vmem:[%s207_s0 + $0x9] sm:$0x1]   ;;  %v108_v8 = vld [vmem:[%s207_s0 + $0x8] sm:$0x1]  }
   0x5   :  { %s137_s30 = smov 72   ;;  %s138_s2 = smov 64   ;;  %v109_v9 = vld [vmem:[%s207_s0 + $0x7] sm:$0x1]   ;;  %v110_v10 = vld [vmem:[%s207_s0 + $0x6] sm:$0x1]  }
   0x6   :  { %13 = vrot.lane.b32.xlu0 %v102_v2, %s133_s16  ;;  %25 = vrot.lane.b32.xlu1 %v104_v3, %s134_s17  ;;  %s139_s7 = smov 56   ;;  %s140_s8 = smov 48   ;;  %v111_v11 = vld [vmem:[%s207_s0 + $0x5] sm:$0x1]   ;;  %v112_v12 = vld [vmem:[%s207_s0 + $0x4] sm:$0x1]  }
   0x7   :  { %s141_s13 = smov 40   ;;  %s142_s14 = smov 32   ;;  %v113_v13 = vld [vmem:[%s207_s0 + $0x3] sm:$0x1]   ;;  %v114_v14 = vld [vmem:[%s207_s0 + $0x2] sm:$0x1]  }
   0x8   :  { %s143_s19 = smov 24   ;;  %s144_s20 = smov 16   ;;  %v115_v15 = vld [vmem:[%s207_s0 + $0x1] sm:$0x1]   ;;  %vm27_vm4 = vcmask 851712   ;;  %vm33_vm5 = vcmask 786112  }
   0x9   :  { %s145_s0 = smov 8   ;;  %vm39_vm6 = vcmask 720512   ;;  %vm45_vm7 = vcmask 654912   ;;  %vm51_vm8 = vcmask 589312   ;;  %vm57_vm9 = vcmask 523712  }
   0xa   :  { %31 = vrot.lane.b32.xlu0 %v105_v4, %s135_s24  ;;  %37 = vrot.lane.b32.xlu1 %v106_v5, %s136_s25  ;;  %vm63_vm10 = vcmask 458112   ;;  %vm69_vm11 = vcmask 392512   ;;  %vm75_vm12 = vcmask 326912   ;;  %vm81_vm13 = vcmask 261312  }
   0xb   :  { %vm87_vm14 = vcmask 195712   ;;  %vm93_vm15 = vcmask 130112  }
   0xe   :  { %43 = vrot.lane.b32.xlu0 %v107_v7, %s137_s30  ;;  %49 = vrot.lane.b32.xlu1 %v108_v8, %s138_s2 }
  0x12   :  { %55 = vrot.lane.b32.xlu0 %v109_v9, %s139_s7  ;;  %61 = vrot.lane.b32.xlu1 %v110_v10, %s140_s8 }
  0x16   :  { %67 = vrot.lane.b32.xlu0 %v111_v11, %s141_s13  ;;  %73 = vrot.lane.b32.xlu1 %v112_v12, %s142_s14 }
  0x1a   :  { %79 = vrot.lane.b32.xlu0 %v113_v13, %s143_s19  ;;  %85 = vrot.lane.b32.xlu1 %v114_v14, %s144_s20 }
  0x1e   :  { %91 = vrot.lane.b32.xlu0 %v115_v15, %s145_s0 }
  0x74   :  { %v8_v16 = vpop.permute.xlu0 %7   ;;  %v20_v17 = vpop.permute.xlu1 %19  }
  0x75   :  { %10 = vst.msk [vmem:[#allocation0] sm:$0x1] %vm9_vm1, %v8_v16  }
  0x78   :  { %v14_v18 = vpop.permute.xlu0 %13   ;;  %v26_v19 = vpop.permute.xlu1 %25  }
  0x79   :  { %16 = vst.msk [vmem:[#allocation0] sm:$0x1] %vm15_vm2, %v14_v18  }
  0x7a   :  { %22 = vst.msk [vmem:[#allocation0] sm:$0x1] %vm21_vm3, %v20_v17  }
  0x7b   :  { %28 = vst.msk [vmem:[#allocation0] sm:$0x1] %vm27_vm4, %v26_v19  }
  0x7c   :  { %v32_v20 = vpop.permute.xlu0 %31   ;;  %v38_v21 = vpop.permute.xlu1 %37  }
  0x7d   :  { %34 = vst.msk [vmem:[#allocation0] sm:$0x1] %vm33_vm5, %v32_v20  }
  0x7e   :  { %40 = vst.msk [vmem:[#allocation0] sm:$0x1] %vm39_vm6, %v38_v21  }
  0x80   :  { %v44_v22 = vpop.permute.xlu0 %43   ;;  %v50_v23 = vpop.permute.xlu1 %49  }
  0x81   :  { %46 = vst.msk [vmem:[#allocation0] sm:$0x1] %vm45_vm7, %v44_v22  }
  0x82   :  { %52 = vst.msk [vmem:[#allocation0] sm:$0x1] %vm51_vm8, %v50_v23  }
  0x84   :  { %v56_v24 = vpop.permute.xlu0 %55   ;;  %v62_v25 = vpop.permute.xlu1 %61  }
  0x85   :  { %58 = vst.msk [vmem:[#allocation0] sm:$0x1] %vm57_vm9, %v56_v24  }
  0x86   :  { %64 = vst.msk [vmem:[#allocation0] sm:$0x1] %vm63_vm10, %v62_v25  }
  0x88   :  { %v68_v26 = vpop.permute.xlu0 %67   ;;  %v74_v27 = vpop.permute.xlu1 %73  }
  0x89   :  { %70 = vst.msk [vmem:[#allocation0] sm:$0x1] %vm69_vm11, %v68_v26  }
  0x8a   :  { %76 = vst.msk [vmem:[#allocation0] sm:$0x1] %vm75_vm12, %v74_v27  }
  0x8c   :  { %v80_v28 = vpop.permute.xlu0 %79   ;;  %v86_v29 = vpop.permute.xlu1 %85  }
  0x8d   :  { %82 = vst.msk [vmem:[#allocation0] sm:$0x1] %vm81_vm13, %v80_v28  }
  0x8e   :  { %88 = vst.msk [vmem:[#allocation0] sm:$0x1] %vm87_vm14, %v86_v29  }
  0x90   :  { %v92_v30 = vpop.permute.xlu0 %91  }
  0x91   :  { %94 = vst.msk [vmem:[#allocation0] sm:$0x1] %vm93_vm15, %v92_v30  }
  0x98   :  { %v98_v31 = vld [vmem:[#allocation0] sm:$0x1] }
  0x99   :  { %100 = vst [vmem:[%s208_s1] sm:$0x1] %v98_v31 }

// kernel: module_parallel.1
= control target key start
LH: loop header
LB: loop body
LE: loop exit
PB: predicated region body
PF: predicated region fallthrough
CT: control target
= control target key end

     0   :  { %s718_s12 = smov 0   ;;  %s802_s0 = inlined_call_operand.vmem [shape: bf16[64,64], index: 0, kind: input, shape index: {}]   ;;  %s803_s1 = inlined_call_operand.vmem [shape: bf16[3,64,128], index: 1, kind: input, shape index: {}]   ;;  %s804_s2 = inlined_call_operand.vmem [shape: f32[1,128], index: 2, kind: input, shape index: {}]   ;;  %s805_s3 = inlined_call_operand.vmem [shape: f32[64,128], index: 3, kind: output, shape index: {}]  }
   0x1 LB: > { %s558_s13 = sadd.s32 4294967295, %s696_s12   ;;  %p562_p0 = scmp.ge.s32.totalorder %s696_s12, 1  ;;  %s696_s12 = sphi %s718_s12, %s13_s12  }
   0x2   : > { %p138_p1 = scmp.lt.s32.totalorder %s696_s12, 3 }
   0x4   : > { %p139_p2 = pnand %p562_p0, %p138_p1 }
   0x5   : > { %v676_v0 = vld [vmem:[%s803_s1 + $0x20] sm:$0xff] (!%p139_p2)   ;;  %s563_s16 = sshll.u32 (!%p139_p2), %s558_s13, 2  ;;  %v677_v1 = vld [vmem:[%s803_s1 + $0x28] sm:$0xff] (!%p139_p2)   ;;  %v678_v2 = vld [vmem:[%s803_s1 + $0x30] sm:$0xff] (!%p139_p2)   ;;  %vm262_vm0 = vcmask (!%p139_p2), 523264   ;;  %vm205_vm1 = vcmask (!%p139_p2), 1040384  }
   0x6   : > { %142 = sbr.rel (%p139_p2) target bundleno = 258 (0x102), region = 32  ;;  %p163_p3 = scmp.lt.s32.totalorder (!%p139_p2), %s563_s16, 7  ;;  %636 = vmatprep.subr.bf16.mxu0 (!%p139_p2), %v676_v0  ;;  %v680_v3 = vld [vmem:[%s803_s1] sm:$0xff] (!%p139_p2)   ;;  %v683_v4 = vld [vmem:[%s803_s1 + $0x8] sm:$0xff] (!%p139_p2)   ;;  %v679_v6 = vld [vmem:[%s803_s1 + $0x38] sm:$0xff] (!%p139_p2)   ;;  %vm216_vm2 = vcmask (!%p139_p2), 1047552  }
   0x7   : > { %637 = vmatpush3.bf16.msra.mxu0 (!%p139_p2), %v676_v0  ;;  %624 = vmatprep.subr.bf16.mxu1 (!%p139_p2), %v680_v3  ;;  %v682_v9 = vld [vmem:[%s803_s1 + $0x40] sm:$0xff] (!%p139_p2)   ;;  %v686_v10 = vld [vmem:[%s803_s1 + $0x10] sm:$0xff] (!%p139_p2)   ;;  %v688_v13 = vld [vmem:[%s803_s1 + $0x18] sm:$0xff] (!%p139_p2)   ;;  %vm206_vm3 = vsmask.f32 (!%p139_p2), 256 }
   0x8   : > { %638 = vmatprep.subr.bf16.mxu0 (!%p139_p2), %v677_v1  ;;  %625 = vmatpush3.bf16.msra.mxu1 (!%p139_p2), %v680_v3  ;;  %vm761_vm4 = vmand (!%p139_p2), %vm205_vm1, %vm206_vm3  ;;  %vm217_vm5 = vsmask.f32 (!%p139_p2), 7424  ;;  %v685_v23 = vld [vmem:[%s803_s1 + $0x48] sm:$0xff] (!%p139_p2)   ;;  %v687_v27 = vld [vmem:[%s803_s1 + $0x50] sm:$0xff] (!%p139_p2)  }
   0x9   : > { %626 = vmatprep.subr.bf16.mxu1 (!%p139_p2), %v683_v4  ;;  %vm768_vm6 = vmand (!%p139_p2), %vm216_vm2, %vm217_vm5  ;;  %v689_v29 = vld [vmem:[%s803_s1 + $0x58] sm:$0xff] (!%p139_p2)   ;;  %v603_v38 = vld [vmem:[%s804_s2] ss:$0 sm:$0xff] (!%p139_p2) }
   0xb   : > { %639 = vmatpush3.bf16.msra.mxu0 (!%p139_p2), %v677_v1 }
   0xc   : > { %640 = vmatprep.subr.bf16.mxu0 (!%p139_p2), %v678_v2  ;;  %627 = vmatpush3.bf16.msra.mxu1 (!%p139_p2), %v683_v4 }
   0xd   : > { %s811_s16 = smov (!%p163_p3, %s563_s16), 7  ;;  %628 = vmatprep.subr.bf16.mxu1 %v686_v10 }
   0xe   : > { %s564_s23 = sshll.u32 %s811_s16, 2  ;;  %s566_s18 = sshll.u32 %s811_s16, 3 }
   0xf   : > { %s166_s26 = scalar_lea.vmem %s802_s0, %s564_s23  ;;  %641 = vmatpush3.bf16.msra.mxu0 %v678_v2  ;;  %s172_s23 = scalar_lea.vmem %s805_s3, %s566_s18 }
  0x10   : > { %v681_v5 = vld [vmem:[%s166_s26] sm:$0xff]   ;;  %v684_v7 = vld [vmem:[%s166_s26 + $0x8] sm:$0xff]   ;;  %642 = vmatprep.subr.bf16.mxu0 %v679_v6  ;;  %629 = vmatpush3.bf16.msra.mxu1 %v686_v10 }
  0x11   : > { %644 = vmatprep.mubr.msk.bf16.mxu0 %vm262_vm0, %v681_v5  ;;  %v190_v8 = vshrl.u32 %v681_v5, 16  ;;  %v193_v11 = vshll.u32 %v681_v5, 16  ;;  %v197_v14 = vshrl.u32 %v684_v7, 16  ;;  %v200_v16 = vshll.u32 %v684_v7, 16  ;;  %630 = vmatprep.subr.bf16.mxu1 %v688_v13 }
  0x13   : > { %v192_v12 = vrot.slane %v190_v8, 7  ;;  %v210_v17 = vrot.slane %v193_v11, 1  ;;  %v199_v18 = vrot.slane %v197_v14, 7  ;;  %643 = vmatpush3.bf16.msra.mxu0 %v679_v6  ;;  %v212_v28 = vrot.slane %v200_v16, 1 }
  0x14   : > { %648 = vmatprep.subr.bf16.mxu0 %v682_v9  ;;  %631 = vmatpush3.bf16.msra.mxu1 %v688_v13 }
  0x15   : > { %v195_v15 = vor.u32 %v193_v11, %v192_v12  ;;  %v211_v21 = vor.u32 %v210_v17, %v190_v8  ;;  %v202_v24 = vor.u32 %v200_v16, %v199_v18  ;;  %v213_v30 = vor.u32 %v212_v28, %v197_v14 }
  0x16   : > { %645 = vmatmul.mubr.msk.bf16.vlgmr.msra.gmra.mrb[0].mxu0 %vm262_vm0, %v684_v7 }
  0x17   : > { %v208_v20 = vsel %vm761_vm4, 0, %v195_v15  ;;  %v219_v25 = vsel %vm768_vm6, %v211_v21, 0  ;;  %649 = vmatpush3.bf16.msra.mxu0 %v682_v9  ;;  %v209_v26 = vsel %vm761_vm4, 0, %v202_v24  ;;  %v220_v31 = vsel %vm768_vm6, %v213_v30, 0 }
  0x18   : > { %632 = vmatprep.mubr.msk.bf16.mxu1 %vm262_vm0, %v208_v20  ;;  %650 = vmatprep.subr.bf16.mxu0 %v685_v23 }
  0x19   : > { %656 = vmatprep.mubr.msk.bf16.mxu0 %vm262_vm0, %v219_v25  ;;  %633 = vmatmul.mubr.msk.bf16.vlgmr.msra.gmra.mrb[0].mxu1 %vm262_vm0, %v209_v26 }
  0x1b   : > { %651 = vmatpush3.bf16.msra.mxu0 %v685_v23 }
  0x1c   : > { %652 = vmatprep.subr.bf16.mxu0 %v687_v27 }
  0x1f   : > { %653 = vmatpush3.bf16.msra.mxu0 %v687_v27 }
  0x20   : > { %654 = vmatprep.subr.bf16.mxu0 %v689_v29 }
  0x23   : > { %655 = vmatpush3.bf16.msra.mxu0 %v689_v29 }
  0x26   : > { %657 = vmatmul.mubr.msk.bf16.vlgmr.msra.gmra.mrb[0].mxu0 %vm262_vm0, %v220_v31 }
  0xec   : > { %v634_v32 = vpop.f32.mrb[0].mxu1 }
  0xed   : > { %v303_v33 = vpop.f32.mrb[1].mxu1 }
  0xee   : > { %v635_v34 = vpop.f32.mrb[2].mxu1 }
  0xef   : > { %v306_v35 = vpop.f32.mrb[3].mxu1 }
  0xf9   : > { %v658_v36 = vpop.f32.mrb[0].mxu0 }
  0xfa   : > { %v660_v37 = vadd.f32 %v658_v36, %v634_v32  ;;  %v468_v39 = vpop.f32.mrb[1].mxu0 }
  0xfb   : > { %v661_v40 = vadd.f32 %v468_v39, %v303_v33  ;;  %v659_v41 = vpop.f32.mrb[2].mxu0 }
  0xfc   : > { %v662_v42 = vadd.f32 %v659_v41, %v635_v34  ;;  %v471_v43 = vpop.f32.mrb[3].mxu0  ;;  %v496_v47 = vadd.f32 %v660_v37, %v603_v38 }
  0xfd   : > { %v494_v44 = vadd.f32 %v661_v40, %v603_v38  ;;  %v663_v45 = vadd.f32 %v471_v43, %v306_v35 }
  0xfe   : > { %v497_v48 = vadd.f32 %v662_v42, %v603_v38  ;;  %500 = vst [vmem:[%s172_s23 + $0x10] sm:$0xff] %v496_v47 }
  0xff   : > { %498 = vst [vmem:[%s172_s23] sm:$0xff] %v494_v44  ;;  %v495_v46 = vadd.f32 %v663_v45, %v603_v38 }
 0x100   : > { %501 = vst [vmem:[%s172_s23 + $0x18] sm:$0xff] %v497_v48 }
 0x101   : > { %499 = vst [vmem:[%s172_s23 + $0x8] sm:$0xff] %v495_v46 }
 0x102 PF: > { %s13_s12 = sadd.s32 1, %s696_s12  }
 0x103   : > { %p10_p4 = scmp.ge.s32.totalorder %s13_s12, 4  }
 0x105   :  { %12 = sbr.rel (!%p10_p4) target bundleno = 1 (0x1), region = 64 }

</bundles_post_ra>
